<compile_context>
chip_gen: v5e
topology: v5e:2x2
jax: 0.10.0
libtpu: 0.0.40
codegen_flags: <defaults>
</compile_context>

<pallas_src>
import functools

import jax
import jax.numpy as jnp
from jax import lax
from jax.experimental import pallas as pl
from jax.experimental.pallas import tpu as pltpu


def _pick_row_tile(n):
    # Largest row tile <= 256 that divides n: keeps the (TM, 2B) f32 temporaries
    # well under v7x's 64 MiB VMEM while amortizing per-step grid overhead.
    for tm in (256, 128, 64, 32, 16, 8):
        if n % tm == 0:
            return tm
    return n  # awkward sizes: single full-row block (allowed by full-dim rule)


def _supcon_kernel(c_ref, a_ref, out_ref, acc_ref, *, batch_size, n_rows,
                   tile_m, temperature, base_temperature):
    i = pl.program_id(0)
    B = batch_size
    n = n_rows
    tm = tile_m
    inv_t = 1.0 / temperature
    scale = -(temperature / base_temperature)

    @pl.when(i == 0)
    def _():
        acc_ref[0] = jnp.float32(0.0)
        acc_ref[1] = jnp.float32(0.0)
        acc_ref[2] = jnp.float32(0.0)

    a = a_ref[...]            # (tm, D)  anchor rows of this tile (original dtype)
    c = c_ref[...]            # (n, D)   full contrast matrix, resident in VMEM

    # anchor_dot_contrast tile:  A . C^T / T   (MXU, f32 accumulation, no
    # materialized transpose of C).
    s = lax.dot_general(
        a, c,
        dimension_numbers=(((1,), (1,)), ((), ())),
        precision=lax.Precision.HIGHEST,
        preferred_element_type=jnp.float32,
    ) * inv_t                                               # (tm, n)

    row_max = jnp.max(s, axis=1, keepdims=True)             # max over ALL cols (torch)
    logits = s - row_max
    e = jnp.exp(logits)                                     # single exp pass

    col = lax.broadcasted_iota(jnp.int32, (tm, n), 1)            # column ids
    row = i * tm + lax.broadcasted_iota(jnp.int32, (tm, 1), 0)   # global row ids
    anchor_v1 = row >= B                                         # (tm, 1) bool

    # View-split row sums; the same-view sum is obtained by subtraction so exp
    # is computed exactly once.
    sum_all = jnp.sum(e, axis=1, keepdims=True)
    sum_v1 = jnp.sum(jnp.where(col >= B, e, 0.0), axis=1, keepdims=True)
    sum_v0 = sum_all - sum_v1
    cross_sum = jnp.where(anchor_v1, sum_v0, sum_v1)        # other-view denominator
    same_sum = sum_all - cross_sum                          # same-view denom (incl. diag)

    # Exactly one positive per anchor: same sample index in the other view.
    pos_col = jnp.where(anchor_v1, row - B, row + B)        # (tm, 1)
    pos_logit = jnp.sum(jnp.where(col == pos_col, logits, 0.0), axis=1, keepdims=True)
    diag_logit = jnp.sum(jnp.where(col == row, logits, 0.0), axis=1, keepdims=True)

    # Main loss: mask.sum(1) == 1, so mean_log_prob_pos is just this log-prob.
    lp_pos = pos_logit - jnp.log(cross_sum)                 # (tm, 1)
    tile_loss = jnp.sum(scale * lp_pos)

    # Diagnostic (torch no_grad branch): diagonal positive, same-view denominator.
    lvec = scale * (diag_logit - jnp.log(same_sum))         # (tm, 1)
    tile_x = jnp.sum(jnp.where(anchor_v1, 0.0, lvec))       # view-0 anchors
    tile_y = jnp.sum(jnp.where(anchor_v1, lvec, 0.0))       # view-1 anchors

    acc_ref[0] += tile_loss
    acc_ref[1] += tile_x
    acc_ref[2] += tile_y

    @pl.when(i == pl.num_programs(0) - 1)
    def _():
        out_ref[0] = acc_ref[0] / n                         # loss.view(2, B).mean()
        out_ref[1] = acc_ref[1] / B                         # mean over view-0 anchors
        out_ref[2] = acc_ref[2] / B                         # mean over view-1 anchors


def supcon_loss(features, temperature=0.07, contrast_mode="all",
                base_temperature=0.07, row_tile=None):
    """Pallas implementation of SupConLoss.forward(features) (labels=None, mask=None)."""
    if features.ndim < 3:
        raise ValueError("`features` needs to be [bsz, n_views, ...]")
    if features.ndim > 3:
        features = features.reshape(features.shape[0], features.shape[1], -1)
    if contrast_mode != "all":
        # TODO(synk): contrast_mode='one' not implemented (the module's
        # (loss, loss_x, loss_y) return requires anchor_count == 2 anyway).
        raise ValueError("only contrast_mode='all' is supported")
    B, V, D = features.shape
    if V != 2:
        raise ValueError("n_views must be 2 (the module unpacks loss_x, loss_y)")
    n = V * B

    # torch.cat(torch.unbind(features, dim=1), dim=0); original dtype kept
    # (the MXU consumes bf16/f32 directly, accumulation is forced to f32 in-kernel).
    contrast = jnp.swapaxes(features, 0, 1).reshape(n, D)

    # Zero-pad the lane (feature) dim to a multiple of 128: lane-dense tiles,
    # and zero columns do not change any dot product.
    if D % 128 != 0:
        dp = pl.cdiv(D, 128) * 128
        contrast = jnp.pad(contrast, ((0, 0), (0, dp - D)))
    dp = contrast.shape[1]

    tm = _pick_row_tile(n) if row_tile is None else int(row_tile)
    if n % tm != 0 or not (tm % 8 == 0 or tm == n):
        raise ValueError("row_tile must divide 2*bsz and be a multiple of 8")
    grid = (n // tm,)

    kernel = functools.partial(
        _supcon_kernel, batch_size=B, n_rows=n, tile_m=tm,
        temperature=float(temperature), base_temperature=float(base_temperature))

    # Resident contrast + double-buffered anchor tile + a handful of (tm, n) f32
    # temporaries; clamp to v7x's 64 MiB physical VMEM.
    itemsize = jnp.dtype(contrast.dtype).itemsize
    vmem_est = itemsize * (n * dp + 2 * tm * dp) + 4 * (8 * tm * n) + (1 << 20)
    vmem_limit = int(min(64 * 1024 * 1024, max(4 * 1024 * 1024, vmem_est)))

    out = pl.pallas_call(
        kernel,
        out_shape=jax.ShapeDtypeStruct((3,), jnp.float32),
        grid_spec=pltpu.PrefetchScalarGridSpec(
            num_scalar_prefetch=0,
            grid=grid,
            in_specs=[
                # full contrast matrix: same block every step -> DMA'd once, stays resident
                pl.BlockSpec((n, dp), lambda i: (0, 0)),
                # streamed anchor-row tile
                pl.BlockSpec((tm, dp), lambda i: (i, 0)),
            ],
            out_specs=pl.BlockSpec(memory_space=pltpu.MemorySpace.SMEM),
            scratch_shapes=[pltpu.SMEM((3,), jnp.float32)],
        ),
        compiler_params=pltpu.CompilerParams(
            # The scalar accumulator carries across row tiles, so the axis must
            # stay sequential; megacore-parallelizing it would race the SMEM sums.
            dimension_semantics=("arbitrary",),
            vmem_limit_bytes=vmem_limit,
        ),
    )(contrast, contrast)
    return out[0], out[1], out[2]


def _supcon_loss_ref(features, temperature=0.07, base_temperature=0.07):
    """Pure-JAX reference mirroring the PyTorch forward (labels=None, mask=None)."""
    if features.ndim > 3:
        features = features.reshape(features.shape[0], features.shape[1], -1)
    B, V, D = features.shape
    contrast = jnp.concatenate([features[:, v] for v in range(V)], axis=0).astype(jnp.float32)
    adc = jnp.matmul(contrast, contrast.T, precision=lax.Precision.HIGHEST) / temperature
    logits = adc - jnp.max(adc, axis=1, keepdims=True)
    mask = jnp.tile(jnp.eye(B, dtype=jnp.float32), (V, V))
    lm = jnp.ones_like(mask).at[:B, :B].set(0).at[B:, B:].set(0)
    mask = mask * lm
    exp_logits = jnp.exp(logits) * lm
    log_prob = logits - jnp.log(exp_logits.sum(1, keepdims=True))
    mlpp = (mask * log_prob).sum(1) / mask.sum(1)
    loss = (-(temperature / base_temperature) * mlpp).reshape(V, B).mean()

    lmx = jnp.ones_like(mask).at[:B, B:].set(0).at[B:, :B].set(0)
    exp_x = jnp.exp(logits) * lmx
    log_prob_x = logits - jnp.log(exp_x.sum(1, keepdims=True))
    mask_x = jnp.eye(V * B, dtype=jnp.float32)
    mlpp_x = (mask_x * log_prob_x).sum(1) / mask_x.sum(1)
    lxy = (-(temperature / base_temperature) * mlpp_x).reshape(V, B).mean(1)
    return loss, lxy[0], lxy[1]


if __name__ == "__main__":
    key = jax.random.PRNGKey(0)
    bsz, n_views, feat_dim = 16, 2, 32
    features = jax.random.normal(key, (bsz, n_views, feat_dim), dtype=jnp.float32)
    # SupCon / SimCLR assume L2-normalized embeddings; at temperature=0.07 the
    # unnormalized logits underflow the masked exp-sum to 0 (log -> NaN), and the
    # PyTorch module produces the same NaN.  Normalize the example inputs.
    features = features / jnp.linalg.norm(features, axis=-1, keepdims=True)

    # row_tile=8 -> grid of 4 row tiles, exercising the cross-step accumulation.
    loss, loss_x, loss_y = supcon_loss(features, row_tile=8)
    jax.block_until_ready((loss, loss_x, loss_y))

    ref_loss, ref_x, ref_y = _supcon_loss_ref(features)
    assert bool(jnp.isfinite(loss)) and bool(jnp.isfinite(loss_x)) and bool(jnp.isfinite(loss_y))
    assert jnp.allclose(loss, ref_loss, rtol=3e-4, atol=1e-5), (loss, ref_loss)
    assert jnp.allclose(loss_x, ref_x, rtol=3e-4, atol=1e-5), (loss_x, ref_x)
    assert jnp.allclose(loss_y, ref_y, rtol=3e-4, atol=1e-5), (loss_y, ref_y)

    # Default (auto) tiling path as well.
    loss2, lx2, ly2 = supcon_loss(features)
    jax.block_until_ready((loss2, lx2, ly2))
    assert jnp.allclose(loss2, ref_loss, rtol=3e-4, atol=1e-5), (loss2, ref_loss)

    print("KERNEL_OK")
</pallas_src>

<mosaic_0001>
module attributes {stable_mosaic.version = 11 : i64} {
  func.func @_supcon_kernel(%arg0: i32, %arg1: memref<32x128xf32, #tpu.memory_space<vmem>>, %arg2: memref<8x128xf32, #tpu.memory_space<vmem>>, %arg3: memref<3xf32, #tpu.memory_space<smem>>, %arg4: memref<3xf32, #tpu.memory_space<smem>>) attributes {dimension_semantics = [#tpu.dimension_semantics<arbitrary>], iteration_bounds = array<i64: 4>, scalar_prefetch = 0 : i64, scratch_operands = 1 : i64, tpu.core_type = #tpu.core_type<tc>, window_params = [{pipeline_mode = #tpu.pipeline_mode<synchronous>, transform_indices = @transform_0, window_bounds = array<i64: 32, 128>}, {transform_indices = @transform_1, window_bounds = array<i64: 8, 128>}, {transform_indices = @transform_2, window_bounds = array<i64: 3>}]} {
    %c0_i32 = arith.constant 0 : i32
    %0 = arith.cmpi eq, %arg0, %c0_i32 : i32
    %1 = arith.extui %0 : i1 to i32
    %c0_i32_0 = arith.constant 0 : i32
    %2 = arith.cmpi ne, %1, %c0_i32_0 : i32
    scf.if %2 {
      %cst_28 = arith.constant 0.000000e+00 : f32
      %c0_29 = arith.constant 0 : index
      %84 = memref.load %arg4[%c0_29] : memref<3xf32, #tpu.memory_space<smem>>
      memref.store %cst_28, %arg4[%c0_29] : memref<3xf32, #tpu.memory_space<smem>>
      %cst_30 = arith.constant 0.000000e+00 : f32
      %c1_31 = arith.constant 1 : index
      %85 = memref.load %arg4[%c1_31] : memref<3xf32, #tpu.memory_space<smem>>
      memref.store %cst_30, %arg4[%c1_31] : memref<3xf32, #tpu.memory_space<smem>>
      %cst_32 = arith.constant 0.000000e+00 : f32
      %c2_33 = arith.constant 2 : index
      %86 = memref.load %arg4[%c2_33] : memref<3xf32, #tpu.memory_space<smem>>
      memref.store %cst_32, %arg4[%c2_33] : memref<3xf32, #tpu.memory_space<smem>>
    } else {
    }
    %c0 = arith.constant 0 : index
    %c0_1 = arith.constant 0 : index
    %3 = vector.load %arg2[%c0, %c0_1] : memref<8x128xf32, #tpu.memory_space<vmem>>, vector<8x128xf32>
    %c0_2 = arith.constant 0 : index
    %c0_3 = arith.constant 0 : index
    %4 = vector.load %arg1[%c0_2, %c0_3] : memref<32x128xf32, #tpu.memory_space<vmem>>, vector<32x128xf32>
    %cst = arith.constant dense<0.000000e+00> : vector<8x32xf32>
    %5 = tpu.matmul %3, %4, %cst {dimension_numbers = #tpu.dot_dimension_numbers<[1], [1], [0], [0], [0, 0, 1, 0], [], []>, precision = #tpu.contract_precision<fp32>} : vector<8x128xf32>, vector<32x128xf32>, vector<8x32xf32> -> vector<8x32xf32>
    %cst_4 = arith.constant 14.2857141 : f32
    %6 = vector.broadcast %cst_4 : f32 to vector<8x32xf32>
    %7 = arith.mulf %5, %6 : vector<8x32xf32>
    %cst_5 = arith.constant dense<0xFF800000> : vector<8xf32>
    %8 = vector.multi_reduction <maximumf>, %7, %cst_5 [1] : vector<8x32xf32> to vector<8xf32>
    %9 = vector.shape_cast %8 : vector<8xf32> to vector<8x1xf32>
    %10 = vector.broadcast %9 : vector<8x1xf32> to vector<8x32xf32>
    %11 = arith.subf %7, %10 : vector<8x32xf32>
    %12 = math.exp %11 : vector<8x32xf32>
    %13 = tpu.iota {dimensions = array<i32: 1>} : vector<8x32xi32>
    %c8_i32 = arith.constant 8 : i32
    %14 = arith.muli %arg0, %c8_i32 : i32
    %15 = tpu.iota {dimensions = array<i32: 0>} : vector<8x1xi32>
    %16 = vector.broadcast %14 : i32 to vector<8x1xi32>
    %17 = arith.addi %16, %15 : vector<8x1xi32>
    %c16_i32 = arith.constant 16 : i32
    %18 = vector.broadcast %c16_i32 : i32 to vector<8x1xi32>
    %19 = arith.cmpi sge, %17, %18 : vector<8x1xi32>
    %cst_6 = arith.constant dense<0.000000e+00> : vector<8xf32>
    %20 = vector.multi_reduction <add>, %12, %cst_6 [1] : vector<8x32xf32> to vector<8xf32>
    %21 = vector.shape_cast %20 : vector<8xf32> to vector<8x1xf32>
    %c16_i32_7 = arith.constant 16 : i32
    %22 = vector.broadcast %c16_i32_7 : i32 to vector<8x32xi32>
    %23 = arith.cmpi sge, %13, %22 : vector<8x32xi32>
    %cst_8 = arith.constant 0.000000e+00 : f32
    %24 = vector.broadcast %cst_8 : f32 to vector<8x32xf32>
    %25 = arith.select %23, %12, %24 : vector<8x32xi1>, vector<8x32xf32>
    %cst_9 = arith.constant dense<0.000000e+00> : vector<8xf32>
    %26 = vector.multi_reduction <add>, %25, %cst_9 [1] : vector<8x32xf32> to vector<8xf32>
    %27 = vector.shape_cast %26 : vector<8xf32> to vector<8x1xf32>
    %28 = arith.subf %21, %27 : vector<8x1xf32>
    %29 = arith.select %19, %28, %27 : vector<8x1xi1>, vector<8x1xf32>
    %30 = arith.subf %21, %29 : vector<8x1xf32>
    %c16_i32_10 = arith.constant 16 : i32
    %31 = vector.broadcast %c16_i32_10 : i32 to vector<8x1xi32>
    %32 = arith.subi %17, %31 : vector<8x1xi32>
    %c16_i32_11 = arith.constant 16 : i32
    %33 = vector.broadcast %c16_i32_11 : i32 to vector<8x1xi32>
    %34 = arith.addi %17, %33 : vector<8x1xi32>
    %35 = arith.select %19, %32, %34 : vector<8x1xi1>, vector<8x1xi32>
    %36 = vector.broadcast %35 : vector<8x1xi32> to vector<8x32xi32>
    %37 = arith.cmpi eq, %13, %36 : vector<8x32xi32>
    %cst_12 = arith.constant 0.000000e+00 : f32
    %38 = vector.broadcast %cst_12 : f32 to vector<8x32xf32>
    %39 = arith.select %37, %11, %38 : vector<8x32xi1>, vector<8x32xf32>
    %cst_13 = arith.constant dense<0.000000e+00> : vector<8xf32>
    %40 = vector.multi_reduction <add>, %39, %cst_13 [1] : vector<8x32xf32> to vector<8xf32>
    %41 = vector.shape_cast %40 : vector<8xf32> to vector<8x1xf32>
    %42 = vector.broadcast %17 : vector<8x1xi32> to vector<8x32xi32>
    %43 = arith.cmpi eq, %13, %42 : vector<8x32xi32>
    %cst_14 = arith.constant 0.000000e+00 : f32
    %44 = vector.broadcast %cst_14 : f32 to vector<8x32xf32>
    %45 = arith.select %43, %11, %44 : vector<8x32xi1>, vector<8x32xf32>
    %cst_15 = arith.constant dense<0.000000e+00> : vector<8xf32>
    %46 = vector.multi_reduction <add>, %45, %cst_15 [1] : vector<8x32xf32> to vector<8xf32>
    %47 = vector.shape_cast %46 : vector<8xf32> to vector<8x1xf32>
    %48 = math.log %29 : vector<8x1xf32>
    %49 = arith.subf %41, %48 : vector<8x1xf32>
    %cst_16 = arith.constant -1.000000e+00 : f32
    %50 = vector.broadcast %cst_16 : f32 to vector<8x1xf32>
    %51 = arith.mulf %50, %49 : vector<8x1xf32>
    %52 = vector.shape_cast %51 : vector<8x1xf32> to vector<1x8x1xf32>
    %cst_17 = arith.constant dense<0.000000e+00> : vector<1xf32>
    %53 = vector.multi_reduction <add>, %52, %cst_17 [1, 2] : vector<1x8x1xf32> to vector<1xf32>
    %54 = vector.shape_cast %53 : vector<1xf32> to vector<1x1x1xf32>
    %55 = vector.extract %54[0, 0, 0] : f32 from vector<1x1x1xf32>
    %56 = math.log %30 : vector<8x1xf32>
    %57 = arith.subf %47, %56 : vector<8x1xf32>
    %cst_18 = arith.constant -1.000000e+00 : f32
    %58 = vector.broadcast %cst_18 : f32 to vector<8x1xf32>
    %59 = arith.mulf %58, %57 : vector<8x1xf32>
    %cst_19 = arith.constant 0.000000e+00 : f32
    %60 = vector.broadcast %cst_19 : f32 to vector<8x1xf32>
    %61 = arith.select %19, %60, %59 : vector<8x1xi1>, vector<8x1xf32>
    %62 = vector.shape_cast %61 : vector<8x1xf32> to vector<1x8x1xf32>
    %cst_20 = arith.constant dense<0.000000e+00> : vector<1xf32>
    %63 = vector.multi_reduction <add>, %62, %cst_20 [1, 2] : vector<1x8x1xf32> to vector<1xf32>
    %64 = vector.shape_cast %63 : vector<1xf32> to vector<1x1x1xf32>
    %65 = vector.extract %64[0, 0, 0] : f32 from vector<1x1x1xf32>
    %cst_21 = arith.constant 0.000000e+00 : f32
    %66 = vector.broadcast %cst_21 : f32 to vector<8x1xf32>
    %67 = arith.select %19, %59, %66 : vector<8x1xi1>, vector<8x1xf32>
    %68 = vector.shape_cast %67 : vector<8x1xf32> to vector<1x8x1xf32>
    %cst_22 = arith.constant dense<0.000000e+00> : vector<1xf32>
    %69 = vector.multi_reduction <add>, %68, %cst_22 [1, 2] : vector<1x8x1xf32> to vector<1xf32>
    %70 = vector.shape_cast %69 : vector<1xf32> to vector<1x1x1xf32>
    %71 = vector.extract %70[0, 0, 0] : f32 from vector<1x1x1xf32>
    %c0_23 = arith.constant 0 : index
    %72 = memref.load %arg4[%c0_23] : memref<3xf32, #tpu.memory_space<smem>>
    %73 = arith.addf %72, %55 : f32
    %c0_24 = arith.constant 0 : index
    %74 = memref.load %arg4[%c0_24] : memref<3xf32, #tpu.memory_space<smem>>
    memref.store %73, %arg4[%c0_24] : memref<3xf32, #tpu.memory_space<smem>>
    %c1 = arith.constant 1 : index
    %75 = memref.load %arg4[%c1] : memref<3xf32, #tpu.memory_space<smem>>
    %76 = arith.addf %75, %65 : f32
    %c1_25 = arith.constant 1 : index
    %77 = memref.load %arg4[%c1_25] : memref<3xf32, #tpu.memory_space<smem>>
    memref.store %76, %arg4[%c1_25] : memref<3xf32, #tpu.memory_space<smem>>
    %c2 = arith.constant 2 : index
    %78 = memref.load %arg4[%c2] : memref<3xf32, #tpu.memory_space<smem>>
    %79 = arith.addf %78, %71 : f32
    %c2_26 = arith.constant 2 : index
    %80 = memref.load %arg4[%c2_26] : memref<3xf32, #tpu.memory_space<smem>>
    memref.store %79, %arg4[%c2_26] : memref<3xf32, #tpu.memory_space<smem>>
    %c3_i32 = arith.constant 3 : i32
    %81 = arith.cmpi eq, %arg0, %c3_i32 : i32
    %82 = arith.extui %81 : i1 to i32
    %c0_i32_27 = arith.constant 0 : i32
    %83 = arith.cmpi ne, %82, %c0_i32_27 : i32
    scf.if %83 {
      %c0_28 = arith.constant 0 : index
      %84 = memref.load %arg4[%c0_28] : memref<3xf32, #tpu.memory_space<smem>>
      %cst_29 = arith.constant 3.200000e+01 : f32
      %85 = arith.divf %84, %cst_29 : f32
      %c0_30 = arith.constant 0 : index
      %86 = memref.load %arg3[%c0_30] : memref<3xf32, #tpu.memory_space<smem>>
      memref.store %85, %arg3[%c0_30] : memref<3xf32, #tpu.memory_space<smem>>
      %c1_31 = arith.constant 1 : index
      %87 = memref.load %arg4[%c1_31] : memref<3xf32, #tpu.memory_space<smem>>
      %cst_32 = arith.constant 1.600000e+01 : f32
      %88 = arith.divf %87, %cst_32 : f32
      %c1_33 = arith.constant 1 : index
      %89 = memref.load %arg3[%c1_33] : memref<3xf32, #tpu.memory_space<smem>>
      memref.store %88, %arg3[%c1_33] : memref<3xf32, #tpu.memory_space<smem>>
      %c2_34 = arith.constant 2 : index
      %90 = memref.load %arg4[%c2_34] : memref<3xf32, #tpu.memory_space<smem>>
      %cst_35 = arith.constant 1.600000e+01 : f32
      %91 = arith.divf %90, %cst_35 : f32
      %c2_36 = arith.constant 2 : index
      %92 = memref.load %arg3[%c2_36] : memref<3xf32, #tpu.memory_space<smem>>
      memref.store %91, %arg3[%c2_36] : memref<3xf32, #tpu.memory_space<smem>>
    } else {
    }
    return
  }
  func.func @transform_0(%arg0: i32) -> (i32, i32) {
    %c0_i32 = arith.constant 0 : i32
    %c0_i32_0 = arith.constant 0 : i32
    %c0_i32_1 = arith.constant 0 : i32
    return %c0_i32, %c0_i32_0 : i32, i32
  }
  func.func @transform_1(%arg0: i32) -> (i32, i32) {
    %c0_i32 = arith.constant 0 : i32
    %c0_i32_0 = arith.constant 0 : i32
    return %arg0, %c0_i32 : i32, i32
  }
  func.func @transform_2(%arg0: i32) -> i32 {
    %c0_i32 = arith.constant 0 : i32
    %c0_i32_0 = arith.constant 0 : i32
    return %c0_i32 : i32
  }
}

</mosaic_0001>

<bundles_post_ra>
// kernel: tpu_custom_call.1
= control target key start
LH: loop header
LB: loop body
LE: loop exit
PB: predicated region body
PF: predicated region fallthrough
CT: control target
= control target key end

     0   :  { %7 = vsyncpa [#allocation4], 0  ;;  %s936_s0 = inlined_call_operand.hbm [shape: f32[32,128], index: 0, kind: input, shape index: {}]   ;;  %s937_s1 = inlined_call_operand.hbm [shape: f32[32,128], index: 1, kind: input, shape index: {}]   ;;  %s938_s2 = inlined_call_operand.hbm [shape: f32[3], index: 2, kind: output, shape index: {}]  }
   0x1   :  { %8 = vsyncpa [#allocation7], 0 }
   0x2   :  { %10 = vsyncpa [#allocation7 + $0x1], 0 }
   0x3   :  { %11 = vsyncpa [#allocation5], 0  ;;  %s817_s9 = smov 0   ;;  %s819_s10 = smov 0  }
   0x4   :  { %s821_s11 = smov 0   ;;  %s823_s12 = smov 0  }
   0x5 LB: > { %s101_s15 = sshll.u32 %s936_s0, 4  ;;  %s839_s16 = sadd.s32 4294967295, %s793_s12   ;;  %s793_s12 = sphi %s823_s12, %s945_s12   ;;  %s789_s11 = sphi %s821_s11, %s944_s11   ;;  %s785_s10 = sphi %s819_s10, %s943_s10   ;;  %s781_s9 = sphi %s817_s9, %s942_s9   ;;  %s102_s15 = int_to_ptr.hbm [resolvable:$true] %s101_s15 }
   0x6   : > { %p570_p0 = scmp.ge.s32.totalorder %s793_s12, 1  ;;  %p59_p1 = scmp.eq.s32.totalorder %s839_s16, 0 }
   0x7   : > { %p90_p2 = scmp.lt.s32.totalorder %s793_s12, 5  ;;  %s795_s18 = smov [#allocation3]  }
   0x8   : > { %s103_s19 = sshll.u32 %s795_s18, 4  ;;  %s796_s20 = smov 128   ;;  %s104_s19 = int_to_ptr.vmem [resolvable:$true] %s103_s19 }
   0x9   : > { %p844_p3 = pnand %p570_p0, %p90_p2  ;;  %s797_s21 = smov 8  }
   0xa   : > { %s853_s22 = sadd.s32 1, %s793_s12   ;;  %s45_s24 = sadd.s32 1, %s789_s11 }
   0xb   : > { %p614_p4 = pneg %p844_p3  ;;  %s42_s23 = ssub.s32 %s793_s12, %s853_s22 }
   0xc   : > { %p43_p6 = scmp.eq.s32.totalorder %s42_s23, 0  ;;  %p52_p7 = scmp.ne.s32.totalorder %s789_s11, %s785_s10 }
   0xd   : > { %p615_p5 = pnand %p614_p4, %p59_p1  ;;  %p53_p8 = scmp.eq.s32.totalorder %s793_s12, 0 }
   0xe   : > { %p58_p9 = scmp.ne.s32.totalorder %s785_s10, %s781_s9  ;;  %p623_p12 = scmp.lt.s32.totalorder %s793_s12, 4 }
   0xf   : > { %617 = dma.hbm_to_vmem [thread:$0]  (!%p615_p5), %s102_s15, 512, %s104_s19, [#allocation4], %s796_s20, %s796_s20, %s797_s21  }
  0x10   : > { %s863_s25 = scalar_select %p43_p6, %s789_s11, %s45_s24  }
  0x11   : > { %p54_p10 = por %p53_p8, %p52_p7  ;;  %p867_p11 = por %p59_p1, %p58_p9 }
  0x12   : > { %s117_s27 = sand.u32 1, %s789_s11   ;;  %s574_s29 = sshll.u32 %s793_s12, 3 }
  0x13   : > { %s573_s28 = sshll.u32 %s117_s27, 3  ;;  %s125_s4 = scalar_lea.hbm %s937_s1, %s574_s29 }
  0x14   : > { %s121_s5 = scalar_lea.vmem [#allocation6], %s573_s28  ;;  %s127_s7 = sshll.u32 %s125_s4, 4  ;;  %s128_s7 = int_to_ptr.hbm [resolvable:$true] %s127_s7 }
  0x15   : > { %s129_s6 = sshll.u32 %s121_s5, 4  ;;  %p877_p13 = pnand %p623_p12, %p54_p10  ;;  %s130_s6 = int_to_ptr.vmem [resolvable:$true] %s129_s6 }
  0x16   : > { %s118_s9 = scalar_lea.sflag [#allocation7], %s117_s27  ;;  %s707_s13 = sshra.s32 %s128_s7, 4  ;;  %s708_s13 = int_to_ptr.hbm [resolvable:$true] %s707_s13 }
  0x17   : > { %s709_s14 = scalar_lea.hbm %s708_s13, 8  ;;  %p711_p2 = pneg %p877_p13 }
  0x18   : > { %p710_p0 = scmp.ne.s32.totalorder %s708_s13, %s709_s14  ;;  %s714_s18 = scalar_lea.hbm %s937_s1, 32 }
  0x19   : > { %p715_p6 = scmp.lt.s32.totalorder %s708_s13, %s937_s1  ;;  %p716_p7 = scmp.lt.s32.totalorder %s714_s18, %s709_s14 }
  0x1a   : > { %p712_p4 = pnand %p711_p2, %p710_p0 }
  0x1b   : > { %p717_p8 = por %p716_p7, %p715_p6 }
  0x1c   : > { %p713_p5 = pneg %p712_p4 }
  0x1e   : > { %p718_p9 = pnand %p717_p8, %p713_p5 }
  0x20   : > { %721 = shalt.err (!%p718_p9)
}
  0x21   : > { %621 = dma.hbm_to_vmem [thread:$0]  (!%p877_p13), %s128_s7, 128, %s130_s6, %s118_s9  }
  0x22   : > { %138 = sbr.rel (%p844_p3) target bundleno = 744 (0x2e8), region = 28 }
  0x27   : > { %768 = dma.done.wait (%p59_p1), [#allocation4], 512  }
  0x28   : > { %770 = vsyncadd (%p59_p1), [#allocation4], 4294966784  ;;  %s145_s21 = sand.u32 1, %s785_s10  }
  0x29   : > { %s577_s23 = sshll.u32 %s145_s21, 3  ;;  %s146_s24 = scalar_lea.sflag [#allocation7], %s145_s21 }
  0x2a   : > { %s149_s27 = scalar_lea.vmem [#allocation6], %s577_s23 }
  0x2b   : > { %772 = dma.done.wait (%p867_p11), %s146_s24, 128  }
  0x2c   : > { %774 = vsyncadd (%p867_p11), %s146_s24, 4294967168  ;;  %v180_v0 = vld [vmem:[#allocation3 + $0x18] sm:$0xff]  ;;  %v179_v1 = vld [vmem:[#allocation3 + $0x10] sm:$0xff]  ;;  %vm367_vm0 = vcmask 261120   ;;  %v374_v43 = vlaneseq  ;;  %s579_s17 = sshll.u32 %s839_s16, 3  ;;  %vm410_vm5 = vcmask 7168  }
  0x2d   : > { %v178_v2 = vld [vmem:[#allocation3 + $0x8] sm:$0xff]  ;;  %v193_v3 = vand.u32 4294901760, %v180_v0  ;;  %v195_v4 = vand.u32 4294901760, %v179_v1  ;;  %v177_v6 = vld [vmem:[#allocation3] sm:$0xff]  ;;  %v379_v45 = vstv %s579_s17  ;;  %s798_s26 = smov 0.0  }
  0x2e   : > { %v197_v5 = vand.u32 4294901760, %v178_v2  ;;  %v176_v7 = vld [vmem:[%s149_s27] sm:$0xff]  ;;  %v199_v12 = vand.u32 4294901760, %v177_v6  ;;  %v378_v44 = vshrl.u32 %v374_v43, 7  ;;  %v375_v49 = vand.u32 127, %v374_v43  ;;  %607 = sst [smem:[#allocation2]] (%p59_p1), %s798_s26 }
  0x2f   : > { %v201_v8 = vand.u32 4294901760, %v176_v7  ;;  %194 = vmatpush.xpose.msra.mxu0 %v193_v3  ;;  %v223_v9 = vsub.f32 %v180_v0, %v193_v3  ;;  %294 = vmatpush.xpose.msra.mxu3 %v193_v3  ;;  %v229_v10 = vsub.f32 %v179_v1, %v195_v4  ;;  %608 = sst [smem:[#allocation2 + $0x1]] (%p59_p1), %s798_s26 }
  0x30   : > { %v235_v11 = vsub.f32 %v178_v2, %v197_v5  ;;  %v241_v20 = vsub.f32 %v177_v6, %v199_v12  ;;  %v380_v46 = vadd.s32 %v379_v45, %v378_v44  ;;  %vm385_vm3 = vcmp.ge.s32.totalorder %v375_v49, 16  ;;  %609 = sst [smem:[#allocation2 + $0x2]] (%p59_p1), %s798_s26  ;;  %p583_p1 = scmp.ne.s32.totalorder %s839_s16, 3 }
  0x31   : > { %v202_v13 = vsub.f32 %v176_v7, %v201_v8  ;;  %265 = vmatpush.xpose.msra.mxu2 %v223_v9  ;;  %v224_v14 = vand.u32 4294901760, %v223_v9  ;;  %v230_v15 = vand.u32 4294901760, %v229_v10  ;;  %s447_s28 = sld [smem:[#allocation2]] }
  0x32   : > { %v236_v19 = vand.u32 4294901760, %v235_v11  ;;  %v242_v25 = vand.u32 4294901760, %v241_v20  ;;  %v580_v47 = vadd.s32 4294967280, %v380_v46  ;;  %v394_v48 = vadd.s32 16, %v380_v46  ;;  %s581_s29 = sld [smem:[#allocation2 + $0x1]] }
  0x33   : > { %v203_v16 = vand.u32 4294901760, %v202_v13  ;;  %196 = vmatpush.xpose.msra.mxu0 %v195_v4  ;;  %v225_v17 = vsub.f32 %v223_v9, %v224_v14  ;;  %v231_v18 = vsub.f32 %v229_v10, %v230_v15  ;;  %296 = vmatpush.xpose.msra.mxu3 %v195_v4  ;;  %vm381_vm1 = vcmp.ge.s32.totalorder %v380_v46, 16  ;;  %s582_s30 = sld [smem:[#allocation2 + $0x2]] }
  0x34   : > { %v237_v24 = vsub.f32 %v235_v11, %v236_v19  ;;  %v243_v28 = vsub.f32 %v241_v20, %v242_v25  ;;  %v395_v50 = vsel %vm381_vm1, %v580_v47, %v394_v48  ;;  %vm401_vm4 = vcmp.eq.s32.totalorder %v375_v49, %v380_v46 }
  0x35   : > { %v226_v21 = vand.u32 4294901760, %v225_v17  ;;  %268 = vmatpush.xpose.msra.mxu2 %v229_v10  ;;  %v204_v22 = vsub.f32 %v202_v13, %v203_v16  ;;  %v232_v23 = vand.u32 4294901760, %v231_v18  ;;  %vm396_vm2 = vcmp.eq.s32.totalorder %v375_v49, %v395_v50 }
  0x36   : > { %v238_v27 = vand.u32 4294901760, %v237_v24  ;;  %v244_v29 = vand.u32 4294901760, %v243_v28 }
  0x37   : > { %227 = vmatpush.xpose.msra.mxu1 %v226_v21  ;;  %198 = vmatpush.xpose.msra.mxu0 %v197_v5  ;;  %v205_v26 = vand.u32 4294901760, %v204_v22 }
  0x38   : > { %298 = vmatpush.xpose.msra.mxu3 %v197_v5 }
  0x39   : > { %271 = vmatpush.xpose.msra.mxu2 %v235_v11 }
  0x3b   : > { %233 = vmatpush.xpose.msra.mxu1 %v232_v23  ;;  %200 = vmatpush.xpose.msra.mxu0 %v199_v12 }
  0x3c   : > { %300 = vmatpush.xpose.msra.mxu3 %v199_v12 }
  0x3d   : > { %274 = vmatpush.xpose.msra.mxu2 %v241_v20 }
  0x3e   : > { %206 = vmatmul.f32.vlgmr.msra.gmra.mxu0 %v205_v26 }
  0x3f   : > { %323 = vmatpush.xpose.msrb.mxu0 %v224_v14  ;;  %239 = vmatpush.xpose.msra.mxu1 %v238_v27 }
  0x40   : > { %304 = vmatmul.f32.vlgmr.msra.gmra.mxu3 %v203_v16  ;;  %277 = vmatmul.f32.vlgmr.msra.gmra.mxu2 %v202_v13 }
  0x43   : > { %327 = vmatpush.xpose.msrb.mxu0 %v230_v15  ;;  %245 = vmatpush.xpose.msra.mxu1 %v244_v29 }
  0x46   : > { %247 = vmatmul.f32.vlgmr.msra.gmra.mxu1 %v201_v8 }
  0x47   : > { %354 = vmatpush.xpose.msrb.mxu1 %v193_v3  ;;  %331 = vmatpush.xpose.msrb.mxu0 %v236_v19 }
  0x4b   : > { %356 = vmatpush.xpose.msrb.mxu1 %v195_v4  ;;  %335 = vmatpush.xpose.msrb.mxu0 %v242_v25 }
  0x4e   : > { %337 = vmatmul.f32.vlgmr.msrb.gmra.mxu0 %v201_v8 }
  0x4f   : > { %358 = vmatpush.xpose.msrb.mxu1 %v197_v5 }
  0x53   : > { %360 = vmatpush.xpose.msrb.mxu1 %v199_v12 }
  0x56   : > { %362 = vmatmul.f32.vlgmr.msrb.gmra.mxu1 %v201_v8 }
  0xbb   : > { %v207_v30 = vpop.f32.mrf.mxu0 }
  0xc3   : > { %v248_v31 = vpop.f32.mrf.mxu1  ;;  %v278_v33 = vpop.f32.mrf.mxu2 }
  0xc4   : > { %v249_v32 = vadd.f32 %v248_v31, %v207_v30  ;;  %v305_v35 = vpop.f32.mrf.mxu3 }
  0xc6   : > { %v279_v34 = vadd.f32 %v278_v33, %v249_v32 }
  0xc8   : > { %v306_v36 = vadd.f32 %v305_v35, %v279_v34 }
  0xcb   : > { %v338_v37 = vpop.f32.mrf.mxu0 }
  0xcc   : > { %v339_v38 = vadd.f32 %v338_v37, %v306_v36 }
  0xd3   : > { %v363_v39 = vpop.f32.mrf.mxu1 }
  0xd4   : > { %v364_v40 = vadd.f32 %v363_v39, %v339_v38 }
  0xd6   : > { %v366_v41 = vmul.f32 14.285714, %v364_v40 }
  0xd8   : > { %v368_v42 = vsel %vm367_vm0, %v366_v41, -inf }
  0xd9   : > { %369 = vmax.xlane.f32.xlu0 %v368_v42 }
 0x14c   : > { %v370_v51 = vpop.xlane.xlu0 %369 }
 0x14d   : > { %v371_v52 = vsub.f32 %v366_v41, %v370_v51 }
 0x14f   : > { %v372_v53 = vmul.f32 1.442695, %v371_v52  ;;  %v397_v54 = vsel %vm396_vm2, %v371_v52, 0.0  ;;  %v402_v60 = vsel %vm401_vm4, %v371_v52, 0.0 }
 0x150   : > { %v398_v55 = vsel %vm367_vm0, %v397_v54, 0.0  ;;  %v403_v61 = vsel %vm367_vm0, %v402_v60, 0.0 }
 0x151   : > { %667 = vpow2.f32 %v372_v53  ;;  %399 = vadd.xlane.f32.xlu2 %v398_v55 }
 0x157   : > { %v668_v56 = vpop.eup %667 }
 0x158   : > { %v382_v57 = vsel %vm367_vm0, %v668_v56, 0.0  ;;  %v386_v58 = vsel %vm385_vm3, %v668_v56, 0.0 }
 0x159   : > { %383 = vadd.xlane.f32.xlu0 %v382_v57  ;;  %v387_v59 = vsel %vm367_vm0, %v386_v58, 0.0 }
 0x15a   : > { %388 = vadd.xlane.f32.xlu1 %v387_v59 }
 0x162   : > { %404 = vadd.xlane.f32.xlu1 %v403_v61 }
 0x1c4   : > { %v400_v6 = vpop.xlane.xlu2 %399 }
 0x1cc   : > { %v384_v62 = vpop.xlane.xlu0 %383 }
 0x1cd   : > { %v389_v63 = vpop.xlane.xlu1 %388 }
 0x1ce   : > { %v390_v0 = vsub.f32 %v384_v62, %v389_v63 }
 0x1d0   : > { %v391_v1 = vsel %vm381_vm1, %v390_v0, %v389_v63 }
 0x1d1   : > { %v392_v2 = vsub.f32 %v384_v62, %v391_v1  ;;  %669 = vlog2.f32 %v391_v1 }
 0x1d3   : > { %671 = vlog2.f32 %v392_v2 }
 0x1d5   : > { %v405_v9 = vpop.xlane.xlu1 %404 }
 0x1d7   : > { %v670_v3 = vpop.eup %669 }
 0x1d8   : > { %v407_v4 = vmul.f32 0.6931472, %v670_v3 }
 0x1d9   : > { %v672_v5 = vpop.eup %671 }
 0x1da   : > { %v422_v7 = vmul.f32 0.6931472, %v672_v5  ;;  %v408_v8 = vsub.f32 %v400_v6, %v407_v4 }
 0x1dc   : > { %v423_v10 = vsub.f32 %v405_v9, %v422_v7  ;;  %v409_v11 = vmul.f32 -1.0, %v408_v8 }
 0x1de   : > { %v424_v12 = vmul.f32 -1.0, %v423_v10  ;;  %v411_v13 = vsel %vm410_vm5, %v409_v11, 0.0 }
 0x1df   : > { %412 = vadd.xlane.f32.xlu2 %v411_v13 }
 0x1e0   : > { %v436_v14 = vsel %vm381_vm1, %v424_v12, 0.0  ;;  %v425_v15 = vsel %vm381_vm1, 0.0, %v424_v12 }
 0x1e1   : > { %v437_v16 = vsel %vm410_vm5, %v436_v14, 0.0  ;;  %v426_v17 = vsel %vm410_vm5, %v425_v15, 0.0 }
 0x1e2   : > { %438 = vadd.xlane.f32.xlu1 %v437_v16  ;;  %427 = vadd.xlane.f32.xlu0 %v426_v17 }
 0x252   : > { %v413_v18 = vpop.xlane.xlu2 %412 }
 0x253   : > { %v414_v19 = vrot.slane %v413_v18, 4 }
 0x255   : > { %v415_v20 = vadd.f32 %v414_v19, %v413_v18  ;;  %v439_v21 = vpop.xlane.xlu1 %438  ;;  %v428_v22 = vpop.xlane.xlu0 %427 }
 0x256   : > { %v440_v23 = vrot.slane %v439_v21, 4  ;;  %v429_v24 = vrot.slane %v428_v22, 4 }
 0x257   : > { %v416_v25 = vrot.slane %v415_v20, 2 }
 0x258   : > { %v441_v26 = vadd.f32 %v440_v23, %v439_v21  ;;  %v430_v27 = vadd.f32 %v429_v24, %v428_v22 }
 0x259   : > { %v417_v28 = vadd.f32 %v416_v25, %v415_v20 }
 0x25a   : > { %v442_v29 = vrot.slane %v441_v26, 2  ;;  %v431_v30 = vrot.slane %v430_v27, 2 }
 0x25b   : > { %v418_v31 = vrot.slane %v417_v28, 1 }
 0x25c   : > { %v443_v32 = vadd.f32 %v442_v29, %v441_v26  ;;  %v432_v33 = vadd.f32 %v431_v30, %v430_v27 }
 0x25d   : > { %v419_v34 = vadd.f32 %v418_v31, %v417_v28 }
 0x25e   : > { %v433_v35 = vrot.slane %v432_v33, 1  ;;  %v444_v36 = vrot.slane %v443_v32, 1 }
 0x25f   : > { %590 = vpush %v419_v34 }
 0x260   : > { %v434_v37 = vadd.f32 %v433_v35, %v432_v33  ;;  %v445_v38 = vadd.f32 %v444_v36, %v443_v32 }
 0x262   : > { %592 = vpush %v434_v37 }
 0x263   : > { %594 = vpush %v445_v38 }
 0x290   : > { %s591_s3 = spop %590 }
 0x291   : > { %s448_s4 = sadd.f32 %s591_s3, %s447_s28 }
 0x293   : > { %450 = sst [smem:[#allocation2]] %s448_s4  ;;  %s593_s5 = spop %592 }
 0x294   : > { %s452_s6 = sadd.f32 %s593_s5, %s581_s29  ;;  %s595_s7 = spop %594 }
 0x295   : > { %s456_s8 = sadd.f32 %s595_s7, %s582_s30  ;;  %462 = sbr.rel (%p583_p1) target bundleno = 738 (0x2e2), region = 44 }
 0x296   : > { %454 = sst [smem:[#allocation2 + $0x1]] %s452_s6 }
 0x297   : > { %458 = sst [smem:[#allocation2 + $0x2]] %s456_s8 }
 0x298   : > { %s463_s9 = sld [smem:[#allocation2]] (!%p583_p1) }
 0x299   : > { %s584_s13 = sld [smem:[#allocation2 + $0x1]] (!%p583_p1) }
 0x29a   : > { %v799_v39 = vmov 32.0   ;;  %v800_v40 = vmov 16.0   ;;  %s585_s14 = sld [smem:[#allocation2 + $0x2]] }
 0x29b   : > { %673 = vrcp.f32 %v799_v39 }
 0x29c   : > { %675 = vrcp.f32 %v800_v40 }
 0x2a1   : > { %v674_v41 = vpop.eup %673 }
 0x2a2   : > { %v676_v42 = vpop.eup %675  ;;  %v465_v43 = vmul.f32 32.0, %v674_v41  ;;  %vm469_vm6 = vweird.f32 %v674_v41 }
 0x2a3   : > { %v477_v44 = vmul.f32 16.0, %v676_v42  ;;  %vm481_vm7 = vweird.f32 %v676_v42 }
 0x2a4   : > { %v466_v45 = vsub.f32 1.0, %v465_v43 }
 0x2a5   : > { %v478_v46 = vsub.f32 1.0, %v477_v44 }
 0x2a6   : > { %v467_v47 = vmul.f32 %v674_v41, %v466_v45 }
 0x2a7   : > { %v479_v48 = vmul.f32 %v676_v42, %v478_v46 }
 0x2a8   : > { %v468_v49 = vadd.f32 %v674_v41, %v467_v47 }
 0x2a9   : > { %v480_v50 = vadd.f32 %v676_v42, %v479_v48 }
 0x2aa   : > { %v470_v51 = vsel %vm469_vm6, %v674_v41, %v468_v49 }
 0x2ab   : > { %596 = vpush %v470_v51  ;;  %v482_v52 = vsel %vm481_vm7, %v676_v42, %v480_v50 }
 0x2ac   : > { %598 = vpush %v482_v52 }
 0x2dc   : > { %s597_s12 = spop %596 }
 0x2dd   : > { %s472_s15 = smul.f32 %s597_s12, %s463_s9  ;;  %s599_s18 = spop %598 }
 0x2de   : > { %s484_s19 = smul.f32 %s599_s18, %s584_s13 }
 0x2df   : > { %474 = sst [smem:[#allocation8]] %s472_s15  ;;  %s496_s20 = smul.f32 %s599_s18, %s585_s14 }
 0x2e0   : > { %486 = sst [smem:[#allocation8 + $0x1]] %s484_s19 }
 0x2e1   : > { %498 = sst [smem:[#allocation8 + $0x2]] %s496_s20 }
 0x2e2 PF: > { %p626_p3 = scmp.eq.s32.totalorder %s839_s16, 3  ;;  %s505_s24 = sshll.u32 %s938_s2, 4  ;;  %s506_s24 = int_to_ptr.hbm [resolvable:$true] %s505_s24 }
 0x2e3   : > { %s801_s27 = smov [#allocation8]  }
 0x2e4   : > { %611 = dma.smem_to_hbm (%p626_p3), %s801_s27, 16, %s506_s24, [#allocation5]  }
 0x2e5   : > { %776 = dma.done.wait (%p626_p3), [#allocation5], 16  }
 0x2e6   : > { %778 = vsyncadd (%p626_p3), [#allocation5], 4294967280 }
 0x2e7   : > { %514 = sfence }
 0x2e8 PF: > { %p14_p10 = scmp.ge.s32.totalorder %s853_s22, 6   ;;  %s942_s9 = smov %s785_s10 }
 0x2e9   : > { %s943_s10 = smov %s789_s11  ;;  %s944_s11 = smov %s863_s25 }
 0x2ea   : > { %s945_s12 = smov %s853_s22  ;;  %16 = sbr.rel (!%p14_p10) target bundleno = 5 (0x5), region = 87 }
 0x2ef   :  { %520 = vsyncpa [#allocation4], 1 }
 0x2f0   :  { %522 = vsyncpa [#allocation4 + $0x1], 1 }
 0x2f1   :  { %523 = vsyncpa [#allocation7], 1 }
 0x2f2   :  { %525 = vsyncpa [#allocation7 + $0x1], 1 }
 0x2f3   :  { %526 = vsyncpa [#allocation5], 1 }
 0x2f4   :  { %528 = vsyncpa [#allocation5 + $0x1], 1 }

</bundles_post_ra>
